<compile_context>
chip_gen: v6e
topology: v6e:2x2x1
jax: 0.10.0
libtpu: 0.0.40
codegen_flags: <defaults>
</compile_context>

<pallas_src>
import functools

import jax
import jax.numpy as jnp
from jax.experimental import pallas as pl
from jax.experimental.pallas import tpu as pltpu


def _round_up(x, m):
    return ((x + m - 1) // m) * m


def _pad2(a, rows, cols):
    return jnp.pad(a, ((0, rows - a.shape[0]), (0, cols - a.shape[1])))


# ----------------------------------------------------------------------------
# Path 1: fully fused two-layer forward, L_hat resident in VMEM.
#   grid = (phase, row_tile):
#     phase 0: h[rows] = relu(x@W0_1 + (L@x)@W1_1 + b1)  -> VMEM scratch
#     phase 1: out[rows] = h@W0_2 + L@(h@W1_2) + b2       (reassociated)
# ----------------------------------------------------------------------------
def _cheb2_fused_kernel(lhat_ref, x_ref, w01_ref, w11_ref, b1_ref,
                        w02_ref, w12_ref, b2_ref, out_ref, h_scr, g_scr, *, tm):
    p = pl.program_id(0)
    i = pl.program_id(1)
    row = pl.multiple_of(i * tm, tm)

    @pl.when(p == 0)
    def _layer1():
        lrows = lhat_ref[pl.ds(row, tm), :]                               # [tm, Np] bf16
        lx = jnp.dot(lrows, x_ref[...], preferred_element_type=jnp.float32)
        xt = x_ref[pl.ds(row, tm), :]
        h = (jnp.dot(xt, w01_ref[...], preferred_element_type=jnp.float32)
             + jnp.dot(lx.astype(jnp.bfloat16), w11_ref[...],
                       preferred_element_type=jnp.float32)
             + b1_ref[...])
        h = jnp.maximum(h, 0.0)                                           # fused ReLU
        h_scr[pl.ds(row, tm), :] = h.astype(jnp.bfloat16)
        # This output block is overwritten in phase 1; write zeros so the
        # intermediate HBM writeback is deterministic (never stale VMEM).
        out_ref[...] = jnp.zeros_like(out_ref)

    @pl.when(p == 1)
    def _layer2():
        # Reassociated: g = h @ W1_2 computed once, then per-row-tile L @ g.
        @pl.when(i == 0)
        def _():
            g_scr[...] = jnp.dot(h_scr[...], w12_ref[...],
                                 preferred_element_type=jnp.float32
                                 ).astype(jnp.bfloat16)

        lrows = lhat_ref[pl.ds(row, tm), :]
        lg = jnp.dot(lrows, g_scr[...], preferred_element_type=jnp.float32)
        ht = h_scr[pl.ds(row, tm), :]
        out = (jnp.dot(ht, w02_ref[...], preferred_element_type=jnp.float32)
               + lg + b2_ref[...])
        out_ref[...] = out.astype(out_ref.dtype)


def cheb2_forward_fused(params, x, lhat, *, tm=128):
    n, cin = x.shape
    hid = params["w0_1"].shape[1]
    cout = params["w0_2"].shape[1]
    n_pad = _round_up(max(n, tm), tm)
    cin_p = _round_up(cin, 128)
    hid_p = _round_up(hid, 128)
    cout_p = _round_up(cout, 128)
    r = n_pad // tm

    bf16 = jnp.bfloat16
    lp = _pad2(lhat, n_pad, n_pad).astype(bf16)     # bf16 stream, f32 accumulation
    xp = _pad2(x, n_pad, cin_p).astype(bf16)
    w01 = _pad2(params["w0_1"], cin_p, hid_p).astype(bf16)
    w11 = _pad2(params["w1_1"], cin_p, hid_p).astype(bf16)
    b1 = _pad2(params["b1"], 1, hid_p)
    w02 = _pad2(params["w0_2"], hid_p, cout_p).astype(bf16)
    w12 = _pad2(params["w1_2"], hid_p, cout_p).astype(bf16)
    b2 = _pad2(params["b2"], 1, cout_p)

    in_specs = [
        pl.BlockSpec((n_pad, n_pad), lambda p, i: (0, 0)),    # L_hat (resident, 1 DMA)
        pl.BlockSpec((n_pad, cin_p), lambda p, i: (0, 0)),    # x     (resident)
        pl.BlockSpec((cin_p, hid_p), lambda p, i: (0, 0)),    # W0_1
        pl.BlockSpec((cin_p, hid_p), lambda p, i: (0, 0)),    # W1_1
        pl.BlockSpec((1, hid_p), lambda p, i: (0, 0)),        # b1
        pl.BlockSpec((hid_p, cout_p), lambda p, i: (0, 0)),   # W0_2
        pl.BlockSpec((hid_p, cout_p), lambda p, i: (0, 0)),   # W1_2
        pl.BlockSpec((1, cout_p), lambda p, i: (0, 0)),       # b2
    ]
    out_spec = pl.BlockSpec((tm, cout_p), lambda p, i: (i, 0))   # lane-dense (128) out

    flops = (2 * n_pad * n_pad * (cin_p + cout_p)
             + 2 * n_pad * (2 * cin_p * hid_p + 2 * hid_p * cout_p))
    bytes_accessed = (2 * n_pad * n_pad + 2 * n_pad * cin_p
                      + 4 * (cin_p * hid_p + hid_p * cout_p)
                      + 4 * n_pad * cout_p)
    cost = pl.CostEstimate(flops=int(flops), transcendentals=0,
                           bytes_accessed=int(bytes_accessed))

    # VMEM budget (worst case: every input double-buffered) + slack; cap so the
    # request stays inside v7x's 64 MiB physical VMEM.
    vmem_est = (2 * (2 * n_pad * n_pad)            # L_hat bf16
                + 2 * (2 * n_pad * cin_p)          # x bf16
                + 2 * n_pad * (hid_p + cout_p)     # h / g scratch bf16
                + 2 * (4 * tm * cout_p)            # out block f32
                + (2 << 20))                       # weights/bias + slack
    vmem_limit = int(min(max(vmem_est, 32 << 20), 64 << 20))

    kernel = functools.partial(_cheb2_fused_kernel, tm=tm)
    out_p = pl.pallas_call(
        kernel,
        out_shape=jax.ShapeDtypeStruct((n_pad, cout_p), jnp.float32),
        grid_spec=pltpu.PrefetchScalarGridSpec(
            num_scalar_prefetch=0,
            grid=(2, r),
            in_specs=in_specs,
            out_specs=out_spec,
            scratch_shapes=[pltpu.VMEM((n_pad, hid_p), bf16),    # h (layer-1 output)
                            pltpu.VMEM((n_pad, cout_p), bf16)],  # g = h @ W1_2
        ),
        compiler_params=pltpu.CompilerParams(
            # The phase -> row dependency flows through the shared h scratch, so
            # the row axis cannot be megacore-sharded here; the tiled fallback
            # path marks its row axis "parallel" instead.
            dimension_semantics=("arbitrary", "arbitrary"),
            vmem_limit_bytes=vmem_limit,
        ),
        cost_estimate=cost,
    )(lp, xp, w01, w11, b1, w02, w12, b2)
    return out_p[:n, :cout]


# ----------------------------------------------------------------------------
# Path 2: per-layer K-tiled ChebConv (fallback when L_hat does not fit VMEM).
#   out = x @ W0 + (L_hat @ x) @ W1 + b    (optional fused ReLU)
# ----------------------------------------------------------------------------
def _chebconv_k2_tiled_kernel(x_rows_ref, lhat_ref, x_cols_ref, w0_ref, w1_ref,
                              b_ref, out_ref, acc_ref, *, apply_relu):
    k = pl.program_id(1)

    @pl.when(k == 0)
    def _():
        acc_ref[...] = jnp.zeros_like(acc_ref)

    # accumulate (L_hat @ x) row-tile over the contraction (k) axis
    acc_ref[...] += jnp.dot(lhat_ref[...], x_cols_ref[...],
                            preferred_element_type=jnp.float32)

    @pl.when(k == pl.num_programs(1) - 1)
    def _():
        out = (jnp.dot(x_rows_ref[...], w0_ref[...],
                       preferred_element_type=jnp.float32)
               + jnp.dot(acc_ref[...].astype(jnp.bfloat16), w1_ref[...],
                         preferred_element_type=jnp.float32)
               + b_ref[...])
        if apply_relu:
            out = jnp.maximum(out, 0.0)
        out_ref[...] = out.astype(out_ref.dtype)


def chebconv_k2_tiled(xp, lp, w0, w1, b, *, apply_relu, out_dtype,
                      tm=128, tk=128):
    n_pad, cin_p = xp.shape
    cout_p = w0.shape[1]
    r, kt = n_pad // tm, n_pad // tk
    kernel = functools.partial(_chebconv_k2_tiled_kernel, apply_relu=apply_relu)
    return pl.pallas_call(
        kernel,
        out_shape=jax.ShapeDtypeStruct((n_pad, cout_p), out_dtype),
        grid_spec=pltpu.PrefetchScalarGridSpec(
            num_scalar_prefetch=0,
            grid=(r, kt),
            in_specs=[
                pl.BlockSpec((tm, cin_p), lambda i, k: (i, 0)),      # x (row tile)
                pl.BlockSpec((tm, tk), lambda i, k: (i, k)),         # L_hat tile
                pl.BlockSpec((tk, cin_p), lambda i, k: (k, 0)),      # x (contraction tile)
                pl.BlockSpec((cin_p, cout_p), lambda i, k: (0, 0)),  # W0
                pl.BlockSpec((cin_p, cout_p), lambda i, k: (0, 0)),  # W1
                pl.BlockSpec((1, cout_p), lambda i, k: (0, 0)),      # bias
            ],
            out_specs=pl.BlockSpec((tm, cout_p), lambda i, k: (i, 0)),
            scratch_shapes=[pltpu.VMEM((tm, cin_p), jnp.float32)],   # L@x accumulator
        ),
        compiler_params=pltpu.CompilerParams(
            dimension_semantics=("parallel", "arbitrary"),
            vmem_limit_bytes=32 << 20,
        ),
    )(xp, lp, xp, w0, w1, b)


def cheb2_forward_tiled(params, x, lhat, *, tm=128, tk=128):
    n, cin = x.shape
    hid = params["w0_1"].shape[1]
    cout = params["w0_2"].shape[1]
    blk = max(tm, tk)
    n_pad = _round_up(max(n, blk), blk)
    cin_p = _round_up(cin, 128)
    hid_p = _round_up(hid, 128)
    cout_p = _round_up(cout, 128)

    bf16 = jnp.bfloat16
    lp = _pad2(lhat, n_pad, n_pad).astype(bf16)
    xp = _pad2(x, n_pad, cin_p).astype(bf16)
    w01 = _pad2(params["w0_1"], cin_p, hid_p).astype(bf16)
    w11 = _pad2(params["w1_1"], cin_p, hid_p).astype(bf16)
    b1 = _pad2(params["b1"], 1, hid_p)
    w02 = _pad2(params["w0_2"], hid_p, cout_p).astype(bf16)
    w12 = _pad2(params["w1_2"], hid_p, cout_p).astype(bf16)
    b2 = _pad2(params["b2"], 1, cout_p)

    # Hidden activation is written back as bf16 -> halves intermediate HBM traffic.
    h = chebconv_k2_tiled(xp, lp, w01, w11, b1, apply_relu=True,
                          out_dtype=bf16, tm=tm, tk=tk)
    out = chebconv_k2_tiled(h, lp, w02, w12, b2, apply_relu=False,
                            out_dtype=jnp.float32, tm=tm, tk=tk)
    return out[:n, :cout]


# ----------------------------------------------------------------------------
# Dispatch: fused resident-L path when L_hat fits a conservative VMEM budget.
# ----------------------------------------------------------------------------
def cheb2_forward(params, x, lhat, *, force_tiled=False):
    n = x.shape[0]
    n_pad = _round_up(max(n, 128), 128)
    resident_bytes = 2 * (2 * n_pad * n_pad)   # bf16 L_hat, double-buffer worst case
    if force_tiled or resident_bytes > (40 << 20):
        return cheb2_forward_tiled(params, x, lhat)
    return cheb2_forward_fused(params, x, lhat)


# ----------------------------------------------------------------------------
# Glue: dense scaled Chebyshev Laplacian  L_hat = 2 L / lambda_max - I
# (sym norm, PyG default lambda_max=2)  =>  L_hat = -D^{-1/2} A D^{-1/2}.
# ----------------------------------------------------------------------------
def build_lhat(edge_index, edge_weight, num_nodes):
    row, col = edge_index[0], edge_index[1]
    w = jnp.where(row != col, edge_weight, 0.0)      # remove self loops
    adj = jnp.zeros((num_nodes, num_nodes), jnp.float32).at[row, col].add(w)
    deg = adj.sum(axis=1)
    dinv = jnp.where(deg > 0, 1.0 / jnp.sqrt(deg), 0.0)
    return -(dinv[:, None] * adj * dinv[None, :])


# ----------------------------------------------------------------------------
# Parameter init (glorot-uniform like PyG ChebConv, zero bias).
# ----------------------------------------------------------------------------
def _glorot(key, shape):
    fan_in, fan_out = shape
    limit = jnp.sqrt(6.0 / (fan_in + fan_out))
    return jax.random.uniform(key, shape, jnp.float32, -limit, limit)


def init_cheb2_params(key, in_channels, out_channels, num_hid=16):
    k = jax.random.split(key, 4)
    return {
        "w0_1": _glorot(k[0], (in_channels, num_hid)),
        "w1_1": _glorot(k[1], (in_channels, num_hid)),
        "b1": jnp.zeros((1, num_hid), jnp.float32),
        "w0_2": _glorot(k[2], (num_hid, out_channels)),
        "w1_2": _glorot(k[3], (num_hid, out_channels)),
        "b2": jnp.zeros((1, out_channels), jnp.float32),
    }


# Plain-JAX f32 reference (inference mode: dropout is identity).
def cheb2_reference(params, x, lhat):
    def layer(z, w0, w1, b):
        return z @ w0 + (lhat @ z) @ w1 + b
    h = jax.nn.relu(layer(x, params["w0_1"], params["w1_1"], params["b1"]))
    return layer(h, params["w0_2"], params["w1_2"], params["b2"])


if __name__ == "__main__":
    key = jax.random.PRNGKey(0)
    N, IN_C, HID, OUT_C = 200, 8, 16, 4      # padded internally to 256 rows / 128 lanes

    k_x, k_w, k_p = jax.random.split(key, 3)
    x = jax.random.normal(k_x, (N, IN_C), jnp.float32)

    # deterministic ring graph (both directions), E = 2*N edges
    src = jnp.arange(N, dtype=jnp.int32)
    dst = (src + 1) % N
    edge_index = jnp.stack(
        [jnp.concatenate([src, dst]), jnp.concatenate([dst, src])], axis=0)
    edge_weight = jax.random.uniform(k_w, (2 * N,), jnp.float32, 0.5, 1.5)

    lhat = build_lhat(edge_index, edge_weight, N)
    params = init_cheb2_params(k_p, IN_C, OUT_C, num_hid=HID)

    fwd = jax.jit(cheb2_forward, static_argnames=("force_tiled",))
    out_fused = fwd(params, x, lhat)                     # fused resident-L kernel
    out_tiled = fwd(params, x, lhat, force_tiled=True)   # K-tiled fallback kernels
    jax.block_until_ready((out_fused, out_tiled))

    ref = cheb2_reference(params, x, lhat)
    assert out_fused.shape == (N, OUT_C)
    assert out_tiled.shape == (N, OUT_C)
    assert bool(jnp.all(jnp.isfinite(out_fused))) and bool(jnp.all(jnp.isfinite(out_tiled)))
    # bf16-streamed kernels vs f32 reference -> loose tolerance
    err_f = float(jnp.max(jnp.abs(out_fused - ref)))
    err_t = float(jnp.max(jnp.abs(out_tiled - ref)))
    assert bool(jnp.allclose(out_fused, ref, rtol=1e-1, atol=1e-1)), f"fused max err {err_f}"
    assert bool(jnp.allclose(out_tiled, ref, rtol=1e-1, atol=1e-1)), f"tiled max err {err_t}"
    print("KERNEL_OK")
</pallas_src>

<mosaic_0001>
module attributes {stable_mosaic.version = 11 : i64} {
  func.func @_cheb2_fused_kernel(%arg0: i32, %arg1: i32, %arg2: memref<256x256xbf16, #tpu.memory_space<vmem>>, %arg3: memref<256x128xbf16, #tpu.memory_space<vmem>>, %arg4: memref<128x128xbf16, #tpu.memory_space<vmem>>, %arg5: memref<128x128xbf16, #tpu.memory_space<vmem>>, %arg6: memref<1x128xf32, #tpu.memory_space<vmem>>, %arg7: memref<128x128xbf16, #tpu.memory_space<vmem>>, %arg8: memref<128x128xbf16, #tpu.memory_space<vmem>>, %arg9: memref<1x128xf32, #tpu.memory_space<vmem>>, %arg10: memref<128x128xf32, #tpu.memory_space<vmem>>, %arg11: memref<256x128xbf16, #tpu.memory_space<vmem>>, %arg12: memref<256x128xbf16, #tpu.memory_space<vmem>>) attributes {dimension_semantics = [#tpu.dimension_semantics<arbitrary>, #tpu.dimension_semantics<arbitrary>], iteration_bounds = array<i64: 2, 2>, scalar_prefetch = 0 : i64, scratch_operands = 2 : i64, tpu.core_type = #tpu.core_type<tc>, window_params = [{pipeline_mode = #tpu.pipeline_mode<synchronous>, transform_indices = @transform_0, window_bounds = array<i64: 256, 256>}, {pipeline_mode = #tpu.pipeline_mode<synchronous>, transform_indices = @transform_1, window_bounds = array<i64: 256, 128>}, {pipeline_mode = #tpu.pipeline_mode<synchronous>, transform_indices = @transform_2, window_bounds = array<i64: 128, 128>}, {pipeline_mode = #tpu.pipeline_mode<synchronous>, transform_indices = @transform_3, window_bounds = array<i64: 128, 128>}, {pipeline_mode = #tpu.pipeline_mode<synchronous>, transform_indices = @transform_4, window_bounds = array<i64: 1, 128>}, {pipeline_mode = #tpu.pipeline_mode<synchronous>, transform_indices = @transform_5, window_bounds = array<i64: 128, 128>}, {pipeline_mode = #tpu.pipeline_mode<synchronous>, transform_indices = @transform_6, window_bounds = array<i64: 128, 128>}, {pipeline_mode = #tpu.pipeline_mode<synchronous>, transform_indices = @transform_7, window_bounds = array<i64: 1, 128>}, {transform_indices = @transform_8, window_bounds = array<i64: 128, 128>}]} {
    %c128_i32 = arith.constant 128 : i32
    %0 = arith.muli %arg1, %c128_i32 : i32
    %1 = tpu.assume_multiple %0, 128 : i32
    %c0_i32 = arith.constant 0 : i32
    %2 = arith.cmpi eq, %arg0, %c0_i32 : i32
    %3 = arith.extui %2 : i1 to i32
    %c0_i32_0 = arith.constant 0 : i32
    %4 = arith.cmpi ne, %3, %c0_i32_0 : i32
    scf.if %4 {
      %8 = arith.index_cast %1 : i32 to index
      %c0 = arith.constant 0 : index
      %9 = vector.load %arg2[%8, %c0] : memref<256x256xbf16, #tpu.memory_space<vmem>>, vector<128x256xbf16>
      %c0_2 = arith.constant 0 : index
      %c0_3 = arith.constant 0 : index
      %10 = vector.load %arg3[%c0_2, %c0_3] : memref<256x128xbf16, #tpu.memory_space<vmem>>, vector<256x128xbf16>
      %cst = arith.constant dense<0.000000e+00> : vector<128x128xf32>
      %11 = tpu.matmul %9, %10, %cst {dimension_numbers = #tpu.dot_dimension_numbers<[1], [0], [0], [1], [0, 0, 1, 1], [], []>} : vector<128x256xbf16>, vector<256x128xbf16>, vector<128x128xf32> -> vector<128x128xf32>
      %12 = arith.index_cast %1 : i32 to index
      %c0_4 = arith.constant 0 : index
      %13 = vector.load %arg3[%12, %c0_4] : memref<256x128xbf16, #tpu.memory_space<vmem>>, vector<128x128xbf16>
      %c0_5 = arith.constant 0 : index
      %c0_6 = arith.constant 0 : index
      %14 = vector.load %arg4[%c0_5, %c0_6] : memref<128x128xbf16, #tpu.memory_space<vmem>>, vector<128x128xbf16>
      %cst_7 = arith.constant dense<0.000000e+00> : vector<128x128xf32>
      %15 = tpu.matmul %13, %14, %cst_7 {dimension_numbers = #tpu.dot_dimension_numbers<[1], [0], [0], [1], [0, 0, 1, 1], [], []>} : vector<128x128xbf16>, vector<128x128xbf16>, vector<128x128xf32> -> vector<128x128xf32>
      %16 = arith.truncf %11 : vector<128x128xf32> to vector<128x128xbf16>
      %c0_8 = arith.constant 0 : index
      %c0_9 = arith.constant 0 : index
      %17 = vector.load %arg5[%c0_8, %c0_9] : memref<128x128xbf16, #tpu.memory_space<vmem>>, vector<128x128xbf16>
      %cst_10 = arith.constant dense<0.000000e+00> : vector<128x128xf32>
      %18 = tpu.matmul %16, %17, %cst_10 {dimension_numbers = #tpu.dot_dimension_numbers<[1], [0], [0], [1], [0, 0, 1, 1], [], []>} : vector<128x128xbf16>, vector<128x128xbf16>, vector<128x128xf32> -> vector<128x128xf32>
      %19 = arith.addf %15, %18 : vector<128x128xf32>
      %c0_11 = arith.constant 0 : index
      %c0_12 = arith.constant 0 : index
      %20 = vector.load %arg6[%c0_11, %c0_12] : memref<1x128xf32, #tpu.memory_space<vmem>>, vector<1x128xf32>
      %21 = vector.broadcast %20 : vector<1x128xf32> to vector<128x128xf32>
      %22 = arith.addf %19, %21 : vector<128x128xf32>
      %cst_13 = arith.constant 0.000000e+00 : f32
      %23 = vector.broadcast %cst_13 : f32 to vector<128x128xf32>
      %24 = arith.maximumf %22, %23 : vector<128x128xf32>
      %25 = arith.truncf %24 : vector<128x128xf32> to vector<128x128xbf16>
      %26 = arith.index_cast %1 : i32 to index
      %c0_14 = arith.constant 0 : index
      %27 = vector.load %arg11[%26, %c0_14] : memref<256x128xbf16, #tpu.memory_space<vmem>>, vector<128x128xbf16>
      tpu.vector_store %arg11[%26, %c0_14], %25 {strides = array<i32>} : memref<256x128xbf16, #tpu.memory_space<vmem>>, vector<128x128xbf16>,
      %cst_15 = arith.constant 0.000000e+00 : f32
      %28 = vector.broadcast %cst_15 : f32 to vector<128x128xf32>
      %c0_16 = arith.constant 0 : index
      %c0_17 = arith.constant 0 : index
      %29 = vector.load %arg10[%c0_16, %c0_17] : memref<128x128xf32, #tpu.memory_space<vmem>>, vector<128x128xf32>
      tpu.vector_store %arg10[%c0_16, %c0_17], %28 {strides = array<i32>} : memref<128x128xf32, #tpu.memory_space<vmem>>, vector<128x128xf32>,
    } else {
    }
    %c1_i32 = arith.constant 1 : i32
    %5 = arith.cmpi eq, %arg0, %c1_i32 : i32
    %6 = arith.extui %5 : i1 to i32
    %c0_i32_1 = arith.constant 0 : i32
    %7 = arith.cmpi ne, %6, %c0_i32_1 : i32
    scf.if %7 {
      %c0_i32_2 = arith.constant 0 : i32
      %8 = arith.cmpi eq, %arg1, %c0_i32_2 : i32
      %9 = arith.extui %8 : i1 to i32
      %c0_i32_3 = arith.constant 0 : i32
      %10 = arith.cmpi ne, %9, %c0_i32_3 : i32
      scf.if %10 {
        %c0_14 = arith.constant 0 : index
        %c0_15 = arith.constant 0 : index
        %24 = vector.load %arg11[%c0_14, %c0_15] : memref<256x128xbf16, #tpu.memory_space<vmem>>, vector<256x128xbf16>
        %c0_16 = arith.constant 0 : index
        %c0_17 = arith.constant 0 : index
        %25 = vector.load %arg8[%c0_16, %c0_17] : memref<128x128xbf16, #tpu.memory_space<vmem>>, vector<128x128xbf16>
        %cst_18 = arith.constant dense<0.000000e+00> : vector<256x128xf32>
        %26 = tpu.matmul %24, %25, %cst_18 {dimension_numbers = #tpu.dot_dimension_numbers<[1], [0], [0], [1], [0, 0, 1, 1], [], []>} : vector<256x128xbf16>, vector<128x128xbf16>, vector<256x128xf32> -> vector<256x128xf32>
        %27 = arith.truncf %26 : vector<256x128xf32> to vector<256x128xbf16>
        %c0_19 = arith.constant 0 : index
        %c0_20 = arith.constant 0 : index
        %28 = vector.load %arg12[%c0_19, %c0_20] : memref<256x128xbf16, #tpu.memory_space<vmem>>, vector<256x128xbf16>
        tpu.vector_store %arg12[%c0_19, %c0_20], %27 {strides = array<i32>} : memref<256x128xbf16, #tpu.memory_space<vmem>>, vector<256x128xbf16>,
      } else {
      }
      %11 = arith.index_cast %1 : i32 to index
      %c0 = arith.constant 0 : index
      %12 = vector.load %arg2[%11, %c0] : memref<256x256xbf16, #tpu.memory_space<vmem>>, vector<128x256xbf16>
      %c0_4 = arith.constant 0 : index
      %c0_5 = arith.constant 0 : index
      %13 = vector.load %arg12[%c0_4, %c0_5] : memref<256x128xbf16, #tpu.memory_space<vmem>>, vector<256x128xbf16>
      %cst = arith.constant dense<0.000000e+00> : vector<128x128xf32>
      %14 = tpu.matmul %12, %13, %cst {dimension_numbers = #tpu.dot_dimension_numbers<[1], [0], [0], [1], [0, 0, 1, 1], [], []>} : vector<128x256xbf16>, vector<256x128xbf16>, vector<128x128xf32> -> vector<128x128xf32>
      %15 = arith.index_cast %1 : i32 to index
      %c0_6 = arith.constant 0 : index
      %16 = vector.load %arg11[%15, %c0_6] : memref<256x128xbf16, #tpu.memory_space<vmem>>, vector<128x128xbf16>
      %c0_7 = arith.constant 0 : index
      %c0_8 = arith.constant 0 : index
      %17 = vector.load %arg7[%c0_7, %c0_8] : memref<128x128xbf16, #tpu.memory_space<vmem>>, vector<128x128xbf16>
      %cst_9 = arith.constant dense<0.000000e+00> : vector<128x128xf32>
      %18 = tpu.matmul %16, %17, %cst_9 {dimension_numbers = #tpu.dot_dimension_numbers<[1], [0], [0], [1], [0, 0, 1, 1], [], []>} : vector<128x128xbf16>, vector<128x128xbf16>, vector<128x128xf32> -> vector<128x128xf32>
      %19 = arith.addf %18, %14 : vector<128x128xf32>
      %c0_10 = arith.constant 0 : index
      %c0_11 = arith.constant 0 : index
      %20 = vector.load %arg9[%c0_10, %c0_11] : memref<1x128xf32, #tpu.memory_space<vmem>>, vector<1x128xf32>
      %21 = vector.broadcast %20 : vector<1x128xf32> to vector<128x128xf32>
      %22 = arith.addf %19, %21 : vector<128x128xf32>
      %c0_12 = arith.constant 0 : index
      %c0_13 = arith.constant 0 : index
      %23 = vector.load %arg10[%c0_12, %c0_13] : memref<128x128xf32, #tpu.memory_space<vmem>>, vector<128x128xf32>
      tpu.vector_store %arg10[%c0_12, %c0_13], %22 {strides = array<i32>} : memref<128x128xf32, #tpu.memory_space<vmem>>, vector<128x128xf32>,
    } else {
    }
    return
  }
  func.func @transform_0(%arg0: i32, %arg1: i32) -> (i32, i32) {
    %c0_i32 = arith.constant 0 : i32
    %c0_i32_0 = arith.constant 0 : i32
    %c0_i32_1 = arith.constant 0 : i32
    return %c0_i32, %c0_i32_0 : i32, i32
  }
  func.func @transform_1(%arg0: i32, %arg1: i32) -> (i32, i32) {
    %c0_i32 = arith.constant 0 : i32
    %c0_i32_0 = arith.constant 0 : i32
    %c0_i32_1 = arith.constant 0 : i32
    return %c0_i32, %c0_i32_0 : i32, i32
  }
  func.func @transform_2(%arg0: i32, %arg1: i32) -> (i32, i32) {
    %c0_i32 = arith.constant 0 : i32
    %c0_i32_0 = arith.constant 0 : i32
    %c0_i32_1 = arith.constant 0 : i32
    return %c0_i32, %c0_i32_0 : i32, i32
  }
  func.func @transform_3(%arg0: i32, %arg1: i32) -> (i32, i32) {
    %c0_i32 = arith.constant 0 : i32
    %c0_i32_0 = arith.constant 0 : i32
    %c0_i32_1 = arith.constant 0 : i32
    return %c0_i32, %c0_i32_0 : i32, i32
  }
  func.func @transform_4(%arg0: i32, %arg1: i32) -> (i32, i32) {
    %c0_i32 = arith.constant 0 : i32
    %c0_i32_0 = arith.constant 0 : i32
    %c0_i32_1 = arith.constant 0 : i32
    return %c0_i32, %c0_i32_0 : i32, i32
  }
  func.func @transform_5(%arg0: i32, %arg1: i32) -> (i32, i32) {
    %c0_i32 = arith.constant 0 : i32
    %c0_i32_0 = arith.constant 0 : i32
    %c0_i32_1 = arith.constant 0 : i32
    return %c0_i32, %c0_i32_0 : i32, i32
  }
  func.func @transform_6(%arg0: i32, %arg1: i32) -> (i32, i32) {
    %c0_i32 = arith.constant 0 : i32
    %c0_i32_0 = arith.constant 0 : i32
    %c0_i32_1 = arith.constant 0 : i32
    return %c0_i32, %c0_i32_0 : i32, i32
  }
  func.func @transform_7(%arg0: i32, %arg1: i32) -> (i32, i32) {
    %c0_i32 = arith.constant 0 : i32
    %c0_i32_0 = arith.constant 0 : i32
    %c0_i32_1 = arith.constant 0 : i32
    return %c0_i32, %c0_i32_0 : i32, i32
  }
  func.func @transform_8(%arg0: i32, %arg1: i32) -> (i32, i32) {
    %c0_i32 = arith.constant 0 : i32
    %c0_i32_0 = arith.constant 0 : i32
    return %arg1, %c0_i32 : i32, i32
  }
}

</mosaic_0001>

<bundles_post_ra>
// kernel: cheb2_forward.1
= control target key start
LH: loop header
LB: loop body
LE: loop exit
PB: predicated region body
PF: predicated region fallthrough
CT: control target
= control target key end

     0   :  { %s3363_s27 = smov 0   ;;  %s3365_s28 = smov 0   ;;  %s3734_s0 = inlined_call_operand.vmem [shape: bf16[256,256], index: 0, kind: input, shape index: {}]   ;;  %s3735_s1 = inlined_call_operand.vmem [shape: bf16[256,128], index: 1, kind: input, shape index: {}]   ;;  %s3736_s2 = inlined_call_operand.vmem [shape: bf16[128,128], index: 2, kind: input, shape index: {}]   ;;  %s3737_s3 = inlined_call_operand.vmem [shape: bf16[128,128], index: 3, kind: input, shape index: {}]   ;;  %s3738_s4 = inlined_call_operand.vmem [shape: f32[1,128], index: 4, kind: input, shape index: {}]   ;;  %s3739_s5 = inlined_call_operand.vmem [shape: bf16[128,128], index: 5, kind: input, shape index: {}]   ;;  %s3740_s6 = inlined_call_operand.vmem [shape: bf16[128,128], index: 6, kind: input, shape index: {}]   ;;  %s3741_s7 = inlined_call_operand.vmem [shape: f32[1,128], index: 7, kind: input, shape index: {}]   ;;  %s3742_s8 = inlined_call_operand.vmem [shape: f32[256,128], index: 8, kind: output, shape index: {}]  }
   0x1   :  { %s3367_s29 = smov 0   ;;  %s3369_s30 = smov 0  }
   0x2   :  { %s3371_s9 = smov 0  }
   0x3 LB: > { %s27_s10 = sadd.s32 1, %s3307_s29  ;;  %s30_s11 = sadd.s32 1, %s3311_s30  ;;  %s3315_s9 = sphi %s3371_s9, %s18_s9   ;;  %s3311_s30 = sphi %s3369_s30, %s3746_s30   ;;  %s3307_s29 = sphi %s3367_s29, %s3745_s29   ;;  %s3303_s28 = sphi %s3365_s28, %s3744_s28   ;;  %s3299_s27 = sphi %s3363_s27, %s3743_s27  }
   0x4   : > { %p28_p0 = scmp.ge.s32.totalorder %s27_s10, 2  ;;  %p2346_p1 = scmp.ge.s32.totalorder %s3315_s9, 1 }
   0x5   : > { %p264_p2 = scmp.lt.s32.totalorder %s3315_s9, 5 }
   0x6   : > { %s3748_s10 = smov (%p28_p0, %s27_s10), 0  ;;  %s3750_s11 = smov (!%p28_p0, %s30_s11), %s3311_s30 }
   0x7   : > { %p265_p3 = pnand %p2346_p1, %p264_p2  ;;  %p32_p4 = scmp.ge.s32.totalorder %s3750_s11, 2 }
   0x8   : > { %s2347_s12 = sshll.u32 (!%p265_p3), %s3299_s27, 4  ;;  %s3399_s13 = sshll.u32 (!%p265_p3), %s3299_s27, 7 }
   0x9   : > { %s3752_s11 = smov (%p32_p4, %s3750_s11), 0  ;;  %268 = sbr.rel (%p265_p3) target bundleno = 1121 (0x461), region = 52 }
   0xa   : > { %p294_p5 = scmp.lt.s32.totalorder (!%p265_p3), %s2347_s12, 31  ;;  %p2350_p6 = scmp.ne.s32.totalorder (!%p265_p3), %s3303_s28, 0 }
   0xe   : > { %s3754_s12 = smov (!%p294_p5, %s2347_s12), 31  ;;  %304 = sbr.rel (%p2350_p6) target bundleno = 551 (0x227), region = 56 }
   0xf   : > { %s2348_s14 = sshll.u32 %s3754_s12, 3  ;;  %s3438_s25 = scalar_lea.vmem (!%p2350_p6), %s3734_s0, %s3399_s13 }
  0x10   : > { %s3404_s17 = scalar_lea.vmem %s3742_s8, %s2348_s14  ;;  %s305_s20 = sshra.s32 (!%p2350_p6), %s3399_s13, 3 }
  0x11   : > { %s3505_s21 = sshll.u32 (!%p2350_p6), %s305_s20, 2 }
  0x12   : > { %s3511_s24 = scalar_lea.vmem (!%p2350_p6), %s3735_s1, %s3505_s21 }
  0x13   : > { %v3133_v0 = vld [vmem:[%s3735_s1 + $0x78] sm:$0xff]   ;;  %v3135_v2 = vld [vmem:[%s3735_s1 + $0x70] sm:$0xff]   ;;  %v3137_v4 = vld [vmem:[%s3735_s1 + $0x68] sm:$0xff]  }
  0x14   : > { %v3134_v1 = vld [vmem:[%s3735_s1 + $0x38] sm:$0xff]   ;;  %2732 = vmatprep.subr.bf16.mxu0 %v3133_v0  ;;  %v3136_v3 = vld [vmem:[%s3735_s1 + $0x30] sm:$0xff]   ;;  %v3138_v5 = vld [vmem:[%s3735_s1 + $0x28] sm:$0xff]  }
  0x15   : > { %2733 = vmatpush3.bf16.msra.mxu0 %v3134_v1  ;;  %v3139_v6 = vld [vmem:[%s3735_s1 + $0x60] sm:$0xff]   ;;  %v3141_v8 = vld [vmem:[%s3735_s1 + $0x58] sm:$0xff]   ;;  %v3143_v10 = vld [vmem:[%s3735_s1 + $0x50] sm:$0xff]  }
  0x16   : > { %2734 = vmatprep.subr.bf16.mxu0 %v3135_v2  ;;  %v3140_v7 = vld [vmem:[%s3735_s1 + $0x20] sm:$0xff]   ;;  %v3142_v9 = vld [vmem:[%s3735_s1 + $0x18] sm:$0xff]   ;;  %v3144_v12 = vld [vmem:[%s3735_s1 + $0x10] sm:$0xff]  }
  0x17   : > { %v3151_v11 = vld [vmem:[%s3438_s25 + $0x4] ss:$8 sps:$4 sm:$0xff]   ;;  %v3173_v17 = vld [vmem:[%s3737_s3 + $0x38] sm:$0xff]   ;;  %v3149_v18 = vld [vmem:[%s3438_s25] ss:$8 sps:$4 sm:$0xff]  }
  0x18   : > { %566 = vmatprep.mubr.bf16.mxu0 %v3151_v11  ;;  %v3145_v13 = vld [vmem:[%s3735_s1 + $0x48] sm:$0xff]   ;;  %v3147_v15 = vld [vmem:[%s3735_s1 + $0x40] sm:$0xff]   ;;  %v3174_v19 = vld [vmem:[%s3737_s3 + $0x30] sm:$0xff]   ;;  %2932 = vmatprep.subr.bf16.mxu1 %v3173_v17 }
  0x19   : > { %2735 = vmatpush3.bf16.msra.mxu0 %v3136_v3  ;;  %v3146_v14 = vld [vmem:[%s3735_s1 + $0x8] sm:$0xff]   ;;  %v3148_v16 = vld [vmem:[%s3735_s1] sm:$0xff]   ;;  %v3152_v20 = vld [vmem:[%s3438_s25 + $0x14] ss:$8 sps:$4 sm:$0xff]   ;;  %2933 = vmatpush3.bf16.msra.mxu1 %v3173_v17 }
  0x1a   : > { %2736 = vmatprep.subr.bf16.mxu0 %v3137_v4  ;;  %v3175_v21 = vld [vmem:[%s3737_s3 + $0x28] sm:$0xff]   ;;  %2934 = vmatprep.subr.bf16.mxu1 %v3174_v19  ;;  %v3176_v22 = vld [vmem:[%s3737_s3 + $0x20] sm:$0xff]   ;;  %v3154_v23 = vld [vmem:[%s3438_s25 + $0x10] ss:$8 sps:$4 sm:$0xff]  }
  0x1b   : > { %v3155_v24 = vld [vmem:[%s3438_s25 + $0x24] ss:$8 sps:$4 sm:$0xff]   ;;  %v3157_v25 = vld [vmem:[%s3438_s25 + $0x20] ss:$8 sps:$4 sm:$0xff]   ;;  %v3158_v26 = vld [vmem:[%s3438_s25 + $0x34] ss:$8 sps:$4 sm:$0xff]  }
  0x1c   : > { %v3160_v27 = vld [vmem:[%s3438_s25 + $0x30] ss:$8 sps:$4 sm:$0xff]   ;;  %v3161_v28 = vld [vmem:[%s3438_s25 + $0x44] ss:$8 sps:$4 sm:$0xff]   ;;  %v3163_v29 = vld [vmem:[%s3438_s25 + $0x40] ss:$8 sps:$4 sm:$0xff]  }
  0x1d   : > { %2737 = vmatpush3.bf16.msra.mxu0 %v3138_v5  ;;  %2935 = vmatpush3.bf16.msra.mxu1 %v3174_v19  ;;  %v3164_v30 = vld [vmem:[%s3438_s25 + $0x54] ss:$8 sps:$4 sm:$0xff]   ;;  %v3166_v31 = vld [vmem:[%s3438_s25 + $0x50] ss:$8 sps:$4 sm:$0xff]   ;;  %v3167_v32 = vld [vmem:[%s3438_s25 + $0x64] ss:$8 sps:$4 sm:$0xff]  }
  0x1e   : > { %2738 = vmatprep.subr.bf16.mxu0 %v3139_v6  ;;  %2936 = vmatprep.subr.bf16.mxu1 %v3175_v21  ;;  %v3169_v33 = vld [vmem:[%s3438_s25 + $0x60] ss:$8 sps:$4 sm:$0xff]   ;;  %v3170_v34 = vld [vmem:[%s3438_s25 + $0x74] ss:$8 sps:$4 sm:$0xff]   ;;  %v3172_v35 = vld [vmem:[%s3438_s25 + $0x70] ss:$8 sps:$4 sm:$0xff]  }
  0x1f   : > { %v3177_v36 = vld [vmem:[%s3737_s3 + $0x18] sm:$0xff]   ;;  %v3178_v37 = vld [vmem:[%s3737_s3 + $0x10] sm:$0xff]   ;;  %v3179_v38 = vld [vmem:[%s3737_s3 + $0x8] sm:$0xff]   ;;  %s3574_s25 = scalar_lea.vmem [#allocation2], %s3505_s21 }
  0x20   : > { %v3180_v39 = vld [vmem:[%s3737_s3] sm:$0xff]   ;;  %v3181_v40 = vld [vmem:[%s3736_s2 + $0x38] sm:$0xff]   ;;  %v3182_v56 = vld [vmem:[%s3736_s2 + $0x30] sm:$0xff]  }
  0x21   : > { %2739 = vmatpush3.bf16.msra.mxu0 %v3140_v7  ;;  %2937 = vmatpush3.bf16.msra.mxu1 %v3175_v21  ;;  %v3183_v59 = vld [vmem:[%s3736_s2 + $0x28] sm:$0xff]   ;;  %v3184_v1 = vld [vmem:[%s3736_s2 + $0x20] sm:$0xff]   ;;  %v3185_v4 = vld [vmem:[%s3736_s2 + $0x18] sm:$0xff]  }
  0x22   : > { %2740 = vmatprep.subr.bf16.mxu0 %v3141_v8  ;;  %2938 = vmatprep.subr.bf16.mxu1 %v3176_v22  ;;  %v3188_v19 = vld [vmem:[%s3736_s2] sm:$0xff]  }
  0x25   : > { %2741 = vmatpush3.bf16.msra.mxu0 %v3142_v9  ;;  %2939 = vmatpush3.bf16.msra.mxu1 %v3176_v22 }
  0x26   : > { %2742 = vmatprep.subr.bf16.mxu0 %v3143_v10  ;;  %2940 = vmatprep.subr.bf16.mxu1 %v3177_v36  ;;  %v3186_v10 = vld [vmem:[%s3736_s2 + $0x10] sm:$0xff]  }
  0x29   : > { %2743 = vmatpush3.bf16.msra.mxu0 %v3144_v12  ;;  %2941 = vmatpush3.bf16.msra.mxu1 %v3177_v36 }
  0x2a   : > { %2744 = vmatprep.subr.bf16.mxu0 %v3145_v13  ;;  %2942 = vmatprep.subr.bf16.mxu1 %v3178_v37  ;;  %v3187_v13 = vld [vmem:[%s3736_s2 + $0x8] sm:$0xff]  }
  0x2d   : > { %2745 = vmatpush3.bf16.msra.mxu0 %v3146_v14  ;;  %2943 = vmatpush3.bf16.msra.mxu1 %v3178_v37 }
  0x2e   : > { %2746 = vmatprep.subr.bf16.mxu0 %v3147_v15  ;;  %2944 = vmatprep.subr.bf16.mxu1 %v3179_v38 }
  0x31   : > { %2747 = vmatpush3.bf16.msra.mxu0 %v3148_v16  ;;  %2945 = vmatpush3.bf16.msra.mxu1 %v3179_v38 }
  0x32   : > { %2946 = vmatprep.subr.bf16.mxu1 %v3180_v39 }
  0x34   : > { %567 = vmatmul.mubr.bf16.vlgmr.msra.gmra.mxu0 %v3149_v18 }
  0x35   : > { %574 = vmatprep.mubr.bf16.mxu0 %v3152_v20  ;;  %2947 = vmatpush3.bf16.msra.mxu1 %v3180_v39  ;;  %v3189_v39 = vld [vmem:[%s3511_s24] sm:$0xff]  }
  0x36   : > { %2964 = vmatprep.subr.bf16.mxu1 %v3181_v40 }
  0x3c   : > { %575 = vmatmul.mubr.bf16.gmra.mxu0 %v3154_v23 }
  0x3d   : > { %582 = vmatprep.mubr.bf16.mxu0 %v3155_v24 }
  0x44   : > { %583 = vmatmul.mubr.bf16.gmra.mxu0 %v3157_v25 }
  0x45   : > { %590 = vmatprep.mubr.bf16.mxu0 %v3158_v26 }
  0x4c   : > { %591 = vmatmul.mubr.bf16.gmra.mxu0 %v3160_v27 }
  0x4d   : > { %598 = vmatprep.mubr.bf16.mxu0 %v3161_v28 }
  0x54   : > { %599 = vmatmul.mubr.bf16.gmra.mxu0 %v3163_v29 }
  0x55   : > { %606 = vmatprep.mubr.bf16.mxu0 %v3164_v30 }
  0x5c   : > { %607 = vmatmul.mubr.bf16.gmra.mxu0 %v3166_v31 }
  0x5d   : > { %614 = vmatprep.mubr.bf16.mxu0 %v3167_v32 }
  0x64   : > { %615 = vmatmul.mubr.bf16.gmra.mxu0 %v3169_v33 }
  0x65   : > { %622 = vmatprep.mubr.bf16.mxu0 %v3170_v34 }
  0x6c   : > { %623 = vmatmul.mubr.bf16.gmra.mxu0 %v3172_v35 }
  0xf4   : > { %v2748_v41 = vpop.f32.mrf.mxu0 }
  0xf6   : > { %v2749_v42 = vpop.f32.mrf.mxu0 }
  0xf7   : > { %v2750_v45 = vadd.f32 %v2749_v42, %v2748_v41  ;;  %v3190_v41 = vld [vmem:[%s3511_s24 + $0x8] sm:$0xff]   ;;  %v3191_v42 = vld [vmem:[%s3511_s24 + $0x10] sm:$0xff]  }
  0xf8   : > { %v2751_v43 = vpop.f32.mrf.mxu0 }
  0xfa   : > { %v2752_v44 = vpop.f32.mrf.mxu0 }
  0xfb   : > { %v2753_v46 = vadd.f32 %v2752_v44, %v2751_v43  ;;  %v3192_v43 = vld [vmem:[%s3511_s24 + $0x18] sm:$0xff]   ;;  %v3193_v44 = vld [vmem:[%s3511_s24 + $0x20] sm:$0xff]  }
  0xfc   : > { %v2754_v47 = vpop.f32.mrf.mxu0 }
  0xfd   : > { %v665_v48 = vpack.c.bf16 %v2753_v46, %v2750_v45  ;;  %v3194_v45 = vld [vmem:[%s3511_s24 + $0x28] sm:$0xff]   ;;  %v3195_v46 = vld [vmem:[%s3511_s24 + $0x30] sm:$0xff]  }
  0xfe   : > { %v2755_v49 = vpop.f32.mrf.mxu0 }
  0xff   : > { %2948 = vmatprep.mubr.bf16.mxu1 %v665_v48  ;;  %v2756_v52 = vadd.f32 %v2755_v49, %v2754_v47  ;;  %v3196_v47 = vld [vmem:[%s3511_s24 + $0x38] sm:$0xff]   ;;  %v3317_v48 = vmov 0.0  }
 0x100   : > { %v2757_v50 = vpop.f32.mrf.mxu0  ;;  %1148 = vst [vmem:[%s3404_s17] sm:$0xff] %v3317_v48  ;;  %1149 = vst [vmem:[%s3404_s17 + $0x8] sm:$0xff] %v3317_v48 }
 0x101   : > { %1150 = vst [vmem:[%s3404_s17 + $0x10] sm:$0xff] %v3317_v48  ;;  %1151 = vst [vmem:[%s3404_s17 + $0x18] sm:$0xff] %v3317_v48 }
 0x102   : > { %v2758_v51 = vpop.f32.mrf.mxu0  ;;  %1152 = vst [vmem:[%s3404_s17 + $0x20] sm:$0xff] %v3317_v48  ;;  %1153 = vst [vmem:[%s3404_s17 + $0x28] sm:$0xff] %v3317_v48 }
 0x103   : > { %v2759_v53 = vadd.f32 %v2758_v51, %v2757_v50  ;;  %1154 = vst [vmem:[%s3404_s17 + $0x30] sm:$0xff] %v3317_v48  ;;  %1155 = vst [vmem:[%s3404_s17 + $0x38] sm:$0xff] %v3317_v48 }
 0x104   : > { %v2760_v54 = vpop.f32.mrf.mxu0  ;;  %1156 = vst [vmem:[%s3404_s17 + $0x40] sm:$0xff] %v3317_v48  ;;  %1157 = vst [vmem:[%s3404_s17 + $0x48] sm:$0xff] %v3317_v48 }
 0x105   : > { %v666_v55 = vpack.c.bf16 %v2759_v53, %v2756_v52  ;;  %1158 = vst [vmem:[%s3404_s17 + $0x50] sm:$0xff] %v3317_v48  ;;  %1159 = vst [vmem:[%s3404_s17 + $0x58] sm:$0xff] %v3317_v48 }
 0x106   : > { %v2761_v57 = vpop.f32.mrf.mxu0  ;;  %1160 = vst [vmem:[%s3404_s17 + $0x60] sm:$0xff] %v3317_v48  ;;  %1161 = vst [vmem:[%s3404_s17 + $0x68] sm:$0xff] %v3317_v48 }
 0x107   : > { %2949 = vmatmul.mubr.bf16.vlgmr.msra.gmra.mxu1 %v666_v55  ;;  %v2762_v61 = vadd.f32 %v2761_v57, %v2760_v54  ;;  %1162 = vst [vmem:[%s3404_s17 + $0x70] sm:$0xff] %v3317_v48  ;;  %1163 = vst [vmem:[%s3404_s17 + $0x78] sm:$0xff] %v3317_v48 }
 0x108   : > { %v2763_v58 = vpop.f32.mrf.mxu0  ;;  %2965 = vmatpush3.bf16.msra.mxu1 %v3181_v40 }
 0x109   : > { %2966 = vmatprep.subr.bf16.mxu1 %v3182_v56 }
 0x10a   : > { %v2764_v60 = vpop.f32.mrf.mxu0 }
 0x10b   : > { %v2765_v62 = vadd.f32 %v2764_v60, %v2763_v58 }
 0x10c   : > { %v2766_v63 = vpop.f32.mrf.mxu0  ;;  %2967 = vmatpush3.bf16.msra.mxu1 %v3182_v56 }
 0x10d   : > { %v667_v0 = vpack.c.bf16 %v2765_v62, %v2762_v61  ;;  %2968 = vmatprep.subr.bf16.mxu1 %v3183_v59 }
 0x10e   : > { %v2767_v2 = vpop.f32.mrf.mxu0 }
 0x10f   : > { %2952 = vmatprep.mubr.bf16.mxu1 %v667_v0  ;;  %v2768_v6 = vadd.f32 %v2767_v2, %v2766_v63 }
 0x110   : > { %v2769_v3 = vpop.f32.mrf.mxu0  ;;  %2969 = vmatpush3.bf16.msra.mxu1 %v3183_v59 }
 0x111   : > { %2970 = vmatprep.subr.bf16.mxu1 %v3184_v1 }
 0x112   : > { %v2770_v5 = vpop.f32.mrf.mxu0 }
 0x113   : > { %v2771_v7 = vadd.f32 %v2770_v5, %v2769_v3  ;;  %v3567_v3 = vld [vmem:[%s3738_s4] ss:$0 sm:$0xff] }
 0x114   : > { %v2772_v8 = vpop.f32.mrf.mxu0  ;;  %2971 = vmatpush3.bf16.msra.mxu1 %v3184_v1 }
 0x115   : > { %v668_v9 = vpack.c.bf16 %v2771_v7, %v2768_v6  ;;  %2972 = vmatprep.subr.bf16.mxu1 %v3185_v4 }
 0x116   : > { %v2773_v11 = vpop.f32.mrf.mxu0 }
 0x117   : > { %2953 = vmatmul.mubr.bf16.gmra.mxu1 %v668_v9  ;;  %v2774_v15 = vadd.f32 %v2773_v11, %v2772_v8 }
 0x118   : > { %v2775_v12 = vpop.f32.mrf.mxu0  ;;  %2973 = vmatpush3.bf16.msra.mxu1 %v3185_v4 }
 0x119   : > { %2974 = vmatprep.subr.bf16.mxu1 %v3186_v10 }
 0x11a   : > { %v2776_v14 = vpop.f32.mrf.mxu0 }
 0x11b   : > { %v2777_v16 = vadd.f32 %v2776_v14, %v2775_v12 }
 0x11c   : > { %v2778_v17 = vpop.f32.mrf.mxu0  ;;  %2975 = vmatpush3.bf16.msra.mxu1 %v3186_v10 }
 0x11d   : > { %v669_v18 = vpack.c.bf16 %v2777_v16, %v2774_v15  ;;  %2976 = vmatprep.subr.bf16.mxu1 %v3187_v13 }
 0x11e   : > { %v2779_v20 = vpop.f32.mrf.mxu0 }
 0x11f   : > { %2956 = vmatprep.mubr.bf16.mxu1 %v669_v18  ;;  %v2780_v23 = vadd.f32 %v2779_v20, %v2778_v17 }
 0x120   : > { %v2781_v21 = vpop.f32.mrf.mxu0  ;;  %2977 = vmatpush3.bf16.msra.mxu1 %v3187_v13 }
 0x121   : > { %2978 = vmatprep.subr.bf16.mxu1 %v3188_v19 }
 0x122   : > { %v2782_v22 = vpop.f32.mrf.mxu0 }
 0x123   : > { %v2783_v24 = vadd.f32 %v2782_v22, %v2781_v21 }
 0x124   : > { %v2784_v25 = vpop.f32.mrf.mxu0  ;;  %2979 = vmatpush3.bf16.msra.mxu1 %v3188_v19 }
 0x125   : > { %v670_v26 = vpack.c.bf16 %v2783_v24, %v2780_v23 }
 0x126   : > { %v2785_v27 = vpop.f32.mrf.mxu0 }
 0x127   : > { %2957 = vmatmul.mubr.bf16.gmra.mxu1 %v670_v26  ;;  %v2786_v30 = vadd.f32 %v2785_v27, %v2784_v25 }
 0x128   : > { %v2787_v28 = vpop.f32.mrf.mxu0 }
 0x12a   : > { %v2788_v29 = vpop.f32.mrf.mxu0 }
 0x12b   : > { %v2789_v31 = vadd.f32 %v2788_v29, %v2787_v28 }
 0x12c   : > { %v2790_v32 = vpop.f32.mrf.mxu0 }
 0x12d   : > { %v671_v33 = vpack.c.bf16 %v2789_v31, %v2786_v30 }
 0x12e   : > { %v2791_v34 = vpop.f32.mrf.mxu0 }
 0x12f   : > { %2960 = vmatprep.mubr.bf16.mxu1 %v671_v33  ;;  %v2792_v37 = vadd.f32 %v2791_v34, %v2790_v32 }
 0x130   : > { %v2793_v35 = vpop.f32.mrf.mxu0 }
 0x132   : > { %v2794_v36 = vpop.f32.mrf.mxu0 }
 0x133   : > { %v2795_v38 = vadd.f32 %v2794_v36, %v2793_v35 }
 0x135   : > { %v672_v40 = vpack.c.bf16 %v2795_v38, %v2792_v37 }
 0x137   : > { %2961 = vmatmul.mubr.bf16.gmra.mxu1 %v672_v40 }
 0x138   : > { %2980 = vmatprep.mubr.bf16.mxu1 %v3189_v39 }
 0x13f   : > { %2981 = vmatmul.mubr.bf16.vlgmr.msra.gmra.mxu1 %v3190_v41 }
 0x140   : > { %2984 = vmatprep.mubr.bf16.mxu1 %v3191_v42 }
 0x147   : > { %2985 = vmatmul.mubr.bf16.gmra.mxu1 %v3192_v43 }
 0x148   : > { %2988 = vmatprep.mubr.bf16.mxu1 %v3193_v44 }
 0x14f   : > { %2989 = vmatmul.mubr.bf16.gmra.mxu1 %v3194_v45 }
 0x150   : > { %2992 = vmatprep.mubr.bf16.mxu1 %v3195_v46 }
 0x157   : > { %2993 = vmatmul.mubr.bf16.gmra.mxu1 %v3196_v47 }
 0x1c7   : > { %v2950_v49 = vpop.f32.mrf.mxu1 }
 0x1c9   : > { %v771_v50 = vpop.f32.mrf.mxu1 }
 0x1cb   : > { %v2951_v51 = vpop.f32.mrf.mxu1 }
 0x1cd   : > { %v774_v52 = vpop.f32.mrf.mxu1 }
 0x1d7   : > { %v2954_v53 = vpop.f32.mrf.mxu1 }
 0x1d9   : > { %v787_v54 = vpop.f32.mrf.mxu1 }
 0x1db   : > { %v2955_v55 = vpop.f32.mrf.mxu1 }
 0x1dd   : > { %v790_v56 = vpop.f32.mrf.mxu1 }
 0x1e7   : > { %v2958_v57 = vpop.f32.mrf.mxu1 }
 0x1e9   : > { %v803_v58 = vpop.f32.mrf.mxu1 }
 0x1eb   : > { %v2959_v59 = vpop.f32.mrf.mxu1 }
 0x1ed   : > { %v806_v60 = vpop.f32.mrf.mxu1 }
 0x1f7   : > { %v2962_v61 = vpop.f32.mrf.mxu1 }
 0x1f9   : > { %v3558_v62 = vpop.f32.mrf.mxu1 }
 0x1fb   : > { %v3560_v63 = vpop.f32.mrf.mxu1 }
 0x1fd   : > { %v3562_v0 = vpop.f32.mrf.mxu1 }
 0x1ff   : > { %v2982_v1 = vpop.f32.mrf.mxu1 }
 0x200   : > { %v973_v2 = vadd.f32 %v2982_v1, %v2950_v49 }
 0x201   : > { %v964_v4 = vpop.f32.mrf.mxu1 }
 0x202   : > { %v965_v5 = vadd.f32 %v964_v4, %v771_v50  ;;  %v1036_v7 = vadd.f32 %v3567_v3, %v973_v2 }
 0x203   : > { %v2983_v6 = vpop.f32.mrf.mxu1 }
 0x204   : > { %v976_v8 = vadd.f32 %v2983_v6, %v2951_v51  ;;  %v1034_v10 = vadd.f32 %v3567_v3, %v965_v5  ;;  %v1052_v14 = vmax.f32 %v1036_v7, 0.0 }
 0x205   : > { %v967_v9 = vpop.f32.mrf.mxu1 }
 0x206   : > { %v1037_v11 = vadd.f32 %v3567_v3, %v976_v8  ;;  %v968_v12 = vadd.f32 %v967_v9, %v774_v52  ;;  %v1050_v19 = vmax.f32 %v1034_v10, 0.0 }
 0x207   : > { %v2986_v13 = vpop.f32.mrf.mxu1 }
 0x208   : > { %v1053_v15 = vmax.f32 %v1037_v11, 0.0  ;;  %v1035_v16 = vadd.f32 %v3567_v3, %v968_v12  ;;  %v989_v17 = vadd.f32 %v2986_v13, %v2954_v53 }
 0x209   : > { %v980_v18 = vpop.f32.mrf.mxu1 }
 0x20a   : > { %v2598_v20 = vpack.c.bf16 %v1053_v15, %v1052_v14  ;;  %v1051_v21 = vmax.f32 %v1035_v16, 0.0  ;;  %v981_v22 = vadd.f32 %v980_v18, %v787_v54  ;;  %v1040_v25 = vadd.f32 %v3567_v3, %v989_v17 }
 0x20b   : > { %v2987_v23 = vpop.f32.mrf.mxu1 }
 0x20c   : > { %2710 = vst [vmem:[%s3574_s25 + $0x8] sm:$0xff] %v2598_v20   ;;  %v2593_v24 = vpack.c.bf16 %v1051_v21, %v1050_v19  ;;  %v992_v26 = vadd.f32 %v2987_v23, %v2955_v55  ;;  %v1038_v28 = vadd.f32 %v3567_v3, %v981_v22  ;;  %v1056_v32 = vmax.f32 %v1040_v25, 0.0 }
 0x20d   : > { %v983_v27 = vpop.f32.mrf.mxu1 }
 0x20e   : > { %2594 = vst [vmem:[%s3574_s25] sm:$0xff] %v2593_v24   ;;  %v1041_v29 = vadd.f32 %v3567_v3, %v992_v26  ;;  %v984_v30 = vadd.f32 %v983_v27, %v790_v56  ;;  %v1054_v37 = vmax.f32 %v1038_v28, 0.0 }
 0x20f   : > { %v2990_v31 = vpop.f32.mrf.mxu1 }
 0x210   : > { %v1057_v33 = vmax.f32 %v1041_v29, 0.0  ;;  %v1039_v34 = vadd.f32 %v3567_v3, %v984_v30  ;;  %v1005_v35 = vadd.f32 %v2990_v31, %v2958_v57 }
 0x211   : > { %v996_v36 = vpop.f32.mrf.mxu1 }
 0x212   : > { %v2608_v38 = vpack.c.bf16 %v1057_v33, %v1056_v32  ;;  %v1055_v39 = vmax.f32 %v1039_v34, 0.0  ;;  %v997_v40 = vadd.f32 %v996_v36, %v803_v58  ;;  %v1044_v43 = vadd.f32 %v3567_v3, %v1005_v35 }
 0x213   : > { %v2991_v41 = vpop.f32.mrf.mxu1 }
 0x214   : > { %2712 = vst [vmem:[%s3574_s25 + $0x18] sm:$0xff] %v2608_v38   ;;  %v2603_v42 = vpack.c.bf16 %v1055_v39, %v1054_v37  ;;  %v1008_v44 = vadd.f32 %v2991_v41, %v2959_v59  ;;  %v1042_v46 = vadd.f32 %v3567_v3, %v997_v40  ;;  %v1060_v50 = vmax.f32 %v1044_v43, 0.0 }
 0x215   : > { %v999_v45 = vpop.f32.mrf.mxu1 }
 0x216   : > { %2711 = vst [vmem:[%s3574_s25 + $0x10] sm:$0xff] %v2603_v42   ;;  %v1045_v47 = vadd.f32 %v3567_v3, %v1008_v44  ;;  %v1000_v48 = vadd.f32 %v999_v45, %v806_v60  ;;  %v1058_v55 = vmax.f32 %v1042_v46, 0.0 }
 0x217   : > { %v2994_v49 = vpop.f32.mrf.mxu1 }
 0x218   : > { %v1061_v51 = vmax.f32 %v1045_v47, 0.0  ;;  %v1043_v52 = vadd.f32 %v3567_v3, %v1000_v48  ;;  %v1021_v53 = vadd.f32 %v2994_v49, %v2962_v61 }
 0x219   : > { %v1012_v54 = vpop.f32.mrf.mxu1 }
 0x21a   : > { %v2618_v56 = vpack.c.bf16 %v1061_v51, %v1060_v50  ;;  %v1059_v57 = vmax.f32 %v1043_v52, 0.0  ;;  %v1013_v58 = vadd.f32 %v1012_v54, %v3558_v62  ;;  %v1048_v60 = vadd.f32 %v3567_v3, %v1021_v53 }
 0x21b   : > { %v2995_v59 = vpop.f32.mrf.mxu1 }
 0x21c   : > { %2714 = vst [vmem:[%s3574_s25 + $0x28] sm:$0xff] %v2618_v56   ;;  %v2613_v1 = vpack.c.bf16 %v1059_v57, %v1058_v55  ;;  %v1024_v2 = vadd.f32 %v2995_v59, %v3560_v63  ;;  %v1046_v5 = vadd.f32 %v3567_v3, %v1013_v58  ;;  %v1064_v7 = vmax.f32 %v1048_v60, 0.0 }
 0x21d   : > { %v1015_v4 = vpop.f32.mrf.mxu1 }
 0x21e   : > { %2713 = vst [vmem:[%s3574_s25 + $0x20] sm:$0xff] %v2613_v1   ;;  %v1049_v61 = vadd.f32 %v3567_v3, %v1024_v2  ;;  %v1016_v6 = vadd.f32 %v1015_v4, %v3562_v0  ;;  %v1062_v9 = vmax.f32 %v1046_v5, 0.0 }
 0x220   : > { %v1065_v8 = vmax.f32 %v1049_v61, 0.0  ;;  %v1047_v62 = vadd.f32 %v3567_v3, %v1016_v6 }
 0x222   : > { %v2628_v10 = vpack.c.bf16 %v1065_v8, %v1064_v7  ;;  %v1063_v11 = vmax.f32 %v1047_v62, 0.0 }
 0x224   : > { %2716 = vst [vmem:[%s3574_s25 + $0x38] sm:$0xff] %v2628_v10   ;;  %v2623_v12 = vpack.c.bf16 %v1063_v11, %v1062_v9 }
 0x226   : > { %2715 = vst [vmem:[%s3574_s25 + $0x30] sm:$0xff] %v2623_v12  }
 0x227 PF: > { %p2428_p7 = scmp.ne.s32.totalorder %s3303_s28, 1 }
 0x228   : > { %p2429_p8 = scmp.ne.s32.totalorder (!%p2428_p7), %s3299_s27, 0 }
 0x229   : > { %1167 = sbr.rel (%p2428_p7) target bundleno = 1121 (0x461), region = 60 }
 0x22e   : > { %1171 = sbr.rel (%p2429_p8) target bundleno = 822 (0x336), region = 64 }
 0x233   : > { %v3197_v63 = vld [vmem:[%s3740_s6 + $0x38] sm:$0xff]   ;;  %v3198_v0 = vld [vmem:[%s3740_s6 + $0x30] sm:$0xff]   ;;  %v3199_v3 = vld [vmem:[%s3740_s6 + $0x28] sm:$0xff]  }
 0x234   : > { %2996 = vmatprep.subr.bf16.mxu0 %v3197_v63  ;;  %3076 = vmatprep.subr.bf16.mxu1 %v3197_v63  ;;  %v3200_v13 = vld [vmem:[%s3740_s6 + $0x20] sm:$0xff]   ;;  %v3201_v16 = vld [vmem:[%s3740_s6 + $0x18] sm:$0xff]   ;;  %v3202_v17 = vld [vmem:[%s3740_s6 + $0x10] sm:$0xff]  }
 0x235   : > { %2997 = vmatpush3.bf16.msra.mxu0 %v3197_v63  ;;  %3084 = vmatpush3.bf16.msra.mxu1 %v3197_v63  ;;  %v3205_v14 = vld [vmem:[#allocation2] sm:$0xff]   ;;  %v3203_v18 = vld [vmem:[%s3740_s6 + $0x8] sm:$0xff]   ;;  %v3209_v22 = vld [vmem:[#allocation2 + $0x10] sm:$0xff]  }
 0x236   : > { %2998 = vmatprep.subr.bf16.mxu0 %v3198_v0  ;;  %3077 = vmatprep.subr.bf16.mxu1 %v3198_v0  ;;  %v3206_v15 = vld [vmem:[#allocation2 + $0x40] sm:$0xff]   ;;  %v3207_v20 = vld [vmem:[#allocation2 + $0x8] sm:$0xff]   ;;  %v3210_v23 = vld [vmem:[#allocation2 + $0x50] sm:$0xff]  }
 0x237   : > { %3012 = vmatprep.mubr.bf16.mxu0 %v3205_v14  ;;  %3028 = vmatprep.mubr.bf16.mxu1 %v3206_v15  ;;  %v3204_v19 = vld [vmem:[%s3740_s6] sm:$0xff]   ;;  %v3208_v21 = vld [vmem:[#allocation2 + $0x48] sm:$0xff]   ;;  %v3211_v24 = vld [vmem:[#allocation2 + $0x18] sm:$0xff]  }
 0x238   : > { %v3212_v25 = vld [vmem:[#allocation2 + $0x58] sm:$0xff]   ;;  %v3213_v26 = vld [vmem:[#allocation2 + $0x20] sm:$0xff]   ;;  %v3215_v28 = vld [vmem:[#allocation2 + $0x28] sm:$0xff]  }
 0x239   : > { %2999 = vmatpush3.bf16.msra.mxu0 %v3198_v0  ;;  %3085 = vmatpush3.bf16.msra.mxu1 %v3198_v0  ;;  %v3214_v27 = vld [vmem:[#allocation2 + $0x60] sm:$0xff]   ;;  %v3216_v29 = vld [vmem:[#allocation2 + $0x68] sm:$0xff]   ;;  %v3217_v30 = vld [vmem:[#allocation2 + $0x30] sm:$0xff]  }
 0x23a   : > { %3000 = vmatprep.subr.bf16.mxu0 %v3199_v3  ;;  %3078 = vmatprep.subr.bf16.mxu1 %v3199_v3  ;;  %v3218_v31 = vld [vmem:[#allocation2 + $0x70] sm:$0xff]   ;;  %v3219_v32 = vld [vmem:[#allocation2 + $0x38] sm:$0xff]  }
 0x23b   : > { %v3220_v33 = vld [vmem:[#allocation2 + $0x78] sm:$0xff]  }
 0x23d   : > { %3001 = vmatpush3.bf16.msra.mxu0 %v3199_v3  ;;  %3086 = vmatpush3.bf16.msra.mxu1 %v3199_v3 }
 0x23e   : > { %3002 = vmatprep.subr.bf16.mxu0 %v3200_v13  ;;  %3079 = vmatprep.subr.bf16.mxu1 %v3200_v13 }
 0x241   : > { %3003 = vmatpush3.bf16.msra.mxu0 %v3200_v13  ;;  %3087 = vmatpush3.bf16.msra.mxu1 %v3200_v13 }
 0x242   : > { %3004 = vmatprep.subr.bf16.mxu0 %v3201_v16  ;;  %3080 = vmatprep.subr.bf16.mxu1 %v3201_v16 }
 0x245   : > { %3005 = vmatpush3.bf16.msra.mxu0 %v3201_v16  ;;  %3088 = vmatpush3.bf16.msra.mxu1 %v3201_v16 }
 0x246   : > { %3006 = vmatprep.subr.bf16.mxu0 %v3202_v17  ;;  %3081 = vmatprep.subr.bf16.mxu1 %v3202_v17 }
 0x249   : > { %3007 = vmatpush3.bf16.msra.mxu0 %v3202_v17  ;;  %3089 = vmatpush3.bf16.msra.mxu1 %v3202_v17 }
 0x24a   : > { %3008 = vmatprep.subr.bf16.mxu0 %v3203_v18  ;;  %3082 = vmatprep.subr.bf16.mxu1 %v3203_v18 }
 0x24d   : > { %3009 = vmatpush3.bf16.msra.mxu0 %v3203_v18  ;;  %3090 = vmatpush3.bf16.msra.mxu1 %v3203_v18 }
 0x24e   : > { %3010 = vmatprep.subr.bf16.mxu0 %v3204_v19  ;;  %3083 = vmatprep.subr.bf16.mxu1 %v3204_v19 }
 0x251   : > { %3011 = vmatpush3.bf16.msra.mxu0 %v3204_v19  ;;  %3091 = vmatpush3.bf16.msra.mxu1 %v3204_v19 }
 0x254   : > { %3013 = vmatmul.mubr.bf16.vlgmr.msra.gmra.mxu0 %v3207_v20  ;;  %3029 = vmatmul.mubr.bf16.vlgmr.msra.gmra.mxu1 %v3208_v21 }
 0x255   : > { %3016 = vmatprep.mubr.bf16.mxu0 %v3209_v22  ;;  %3032 = vmatprep.mubr.bf16.mxu1 %v3210_v23 }
 0x25c   : > { %3017 = vmatmul.mubr.bf16.gmra.mxu0 %v3211_v24  ;;  %3033 = vmatmul.mubr.bf16.gmra.mxu1 %v3212_v25 }
 0x25d   : > { %3020 = vmatprep.mubr.bf16.mxu0 %v3213_v26  ;;  %3036 = vmatprep.mubr.bf16.mxu1 %v3214_v27 }
 0x264   : > { %3021 = vmatmul.mubr.bf16.gmra.mxu0 %v3215_v28  ;;  %3037 = vmatmul.mubr.bf16.gmra.mxu1 %v3216_v29 }
 0x265   : > { %3024 = vmatprep.mubr.bf16.mxu0 %v3217_v30  ;;  %3040 = vmatprep.mubr.bf16.mxu1 %v3218_v31 }
 0x26c   : > { %3025 = vmatmul.mubr.bf16.gmra.mxu0 %v3219_v32  ;;  %3041 = vmatmul.mubr.bf16.gmra.mxu1 %v3220_v33 }
 0x314   : > { %v3014_v34 = vpop.f32.mrf.mxu0  ;;  %v3030_v35 = vpop.f32.mrf.mxu1 }
 0x316   : > { %v1398_v36 = vpop.f32.mrf.mxu0  ;;  %v1462_v37 = vpop.f32.mrf.mxu1 }
 0x318   : > { %v3015_v38 = vpop.f32.mrf.mxu0  ;;  %v3031_v39 = vpop.f32.mrf.mxu1 }
 0x319   : > { %v2638_v40 = vpack.c.bf16 %v3015_v38, %v3014_v34  ;;  %v2678_v41 = vpack.c.bf16 %v3031_v39, %v3030_v35 }
 0x31a   : > { %v1401_v42 = vpop.f32.mrf.mxu0  ;;  %v1465_v43 = vpop.f32.mrf.mxu1 }
 0x31b   : > { %2717 = vst [vmem:[#allocation3 + $0x8] sm:$0xff] %v2638_v40   ;;  %2725 = vst [vmem:[#allocation3 + $0x48] sm:$0xff] %v2678_v41   ;;  %v2633_v44 = vpack.c.bf16 %v1401_v42, %v1398_v36  ;;  %v2673_v45 = vpack.c.bf16 %v1465_v43, %v1462_v37 }
 0x31c   : > { %v3018_v46 = vpop.f32.mrf.mxu0  ;;  %v3034_v47 = vpop.f32.mrf.mxu1 }
 0x31d   : > { %2634 = vst [vmem:[#allocation3] sm:$0xff] %v2633_v44   ;;  %2724 = vst [vmem:[#allocation3 + $0x40] sm:$0xff] %v2673_v45  }
 0x31e   : > { %v1414_v48 = vpop.f32.mrf.mxu0  ;;  %v1478_v49 = vpop.f32.mrf.mxu1 }
 0x320   : > { %v3019_v50 = vpop.f32.mrf.mxu0  ;;  %v3035_v51 = vpop.f32.mrf.mxu1 }
 0x321   : > { %v2648_v52 = vpack.c.bf16 %v3019_v50, %v3018_v46  ;;  %v2688_v53 = vpack.c.bf16 %v3035_v51, %v3034_v47 }
 0x322   : > { %v1417_v54 = vpop.f32.mrf.mxu0  ;;  %v1481_v55 = vpop.f32.mrf.mxu1 }
 0x323   : > { %2719 = vst [vmem:[#allocation3 + $0x18] sm:$0xff] %v2648_v52   ;;  %2727 = vst [vmem:[#allocation3 + $0x58] sm:$0xff] %v2688_v53   ;;  %v2643_v56 = vpack.c.bf16 %v1417_v54, %v1414_v48  ;;  %v2683_v57 = vpack.c.bf16 %v1481_v55, %v1478_v49 }
 0x324   : > { %v3022_v58 = vpop.f32.mrf.mxu0  ;;  %v3038_v59 = vpop.f32.mrf.mxu1 }
 0x325   : > { %2718 = vst [vmem:[#allocation3 + $0x10] sm:$0xff] %v2643_v56   ;;  %2726 = vst [vmem:[#allocation3 + $0x50] sm:$0xff] %v2683_v57  }
 0x326   : > { %v1430_v1 = vpop.f32.mrf.mxu0  ;;  %v1494_v60 = vpop.f32.mrf.mxu1 }
 0x328   : > { %v3023_v2 = vpop.f32.mrf.mxu0  ;;  %v3039_v4 = vpop.f32.mrf.mxu1 }
 0x329   : > { %v2658_v5 = vpack.c.bf16 %v3023_v2, %v3022_v58  ;;  %v2698_v61 = vpack.c.bf16 %v3039_v4, %v3038_v59 }
 0x32a   : > { %v1433_v6 = vpop.f32.mrf.mxu0  ;;  %v1497_v7 = vpop.f32.mrf.mxu1 }
 0x32b   : > { %2721 = vst [vmem:[#allocation3 + $0x28] sm:$0xff] %v2658_v5   ;;  %2729 = vst [vmem:[#allocation3 + $0x68] sm:$0xff] %v2698_v61   ;;  %v2653_v8 = vpack.c.bf16 %v1433_v6, %v1430_v1  ;;  %v2693_v62 = vpack.c.bf16 %v1497_v7, %v1494_v60 }
 0x32c   : > { %v3026_v9 = vpop.f32.mrf.mxu0  ;;  %v3042_v10 = vpop.f32.mrf.mxu1 }
 0x32d   : > { %2720 = vst [vmem:[#allocation3 + $0x20] sm:$0xff] %v2653_v8   ;;  %2728 = vst [vmem:[#allocation3 + $0x60] sm:$0xff] %v2693_v62  }
 0x32e   : > { %v1446_v11 = vpop.f32.mrf.mxu0  ;;  %v1510_v12 = vpop.f32.mrf.mxu1 }
 0x330   : > { %v3027_v63 = vpop.f32.mrf.mxu0  ;;  %v3043_v0 = vpop.f32.mrf.mxu1 }
 0x331   : > { %v2668_v3 = vpack.c.bf16 %v3027_v63, %v3026_v9  ;;  %v2708_v13 = vpack.c.bf16 %v3043_v0, %v3042_v10 }
 0x332   : > { %v1449_v14 = vpop.f32.mrf.mxu0  ;;  %v1513_v15 = vpop.f32.mrf.mxu1 }
 0x333   : > { %2723 = vst [vmem:[#allocation3 + $0x38] sm:$0xff] %v2668_v3   ;;  %2731 = vst [vmem:[#allocation3 + $0x78] sm:$0xff] %v2708_v13   ;;  %v2663_v16 = vpack.c.bf16 %v1449_v14, %v1446_v11  ;;  %v2703_v17 = vpack.c.bf16 %v1513_v15, %v1510_v12 }
 0x335   : > { %2722 = vst [vmem:[#allocation3 + $0x30] sm:$0xff] %v2663_v16   ;;  %2730 = vst [vmem:[#allocation3 + $0x70] sm:$0xff] %v2703_v17  }
 0x336 PF: > { %v3223_v20 = vld [vmem:[%s3739_s5 + $0x38] sm:$0xff]   ;;  %v3226_v23 = vld [vmem:[%s3739_s5 + $0x30] sm:$0xff]   ;;  %v3227_v24 = vld [vmem:[#allocation3 + $0x68] sm:$0xff]   ;;  %s1685_s14 = sshra.s32 %s3399_s13, 3  ;;  %s3651_s20 = scalar_lea.vmem %s3734_s0, %s3399_s13 }
 0x337   : > { %3044 = vmatprep.subr.bf16.mxu1 %v3223_v20  ;;  %v3228_v25 = vld [vmem:[#allocation3 + $0x28] sm:$0xff]   ;;  %v3230_v27 = vld [vmem:[#allocation3 + $0x60] sm:$0xff]   ;;  %v3233_v30 = vld [vmem:[#allocation3 + $0x58] sm:$0xff]   ;;  %s2520_s25 = sshll.u32 %s1685_s14, 2 }
 0x338   : > { %3045 = vmatpush3.bf16.msra.mxu1 %v3223_v20  ;;  %v3229_v26 = vld [vmem:[%s3739_s5 + $0x28] sm:$0xff]   ;;  %v3231_v28 = vld [vmem:[#allocation3 + $0x20] sm:$0xff]   ;;  %v3235_v31 = vld [vmem:[%s3739_s5 + $0x18] sm:$0xff]   ;;  %s3657_s22 = scalar_lea.vmem [#allocation2], %s2520_s25 }
 0x339   : > { %3046 = vmatprep.subr.bf16.mxu1 %v3226_v23  ;;  %v3232_v29 = vld [vmem:[%s3739_s5 + $0x20] sm:$0xff]   ;;  %v3234_v32 = vld [vmem:[#allocation3 + $0x18] sm:$0xff]   ;;  %v3236_v33 = vld [vmem:[#allocation3 + $0x50] sm:$0xff]  }
 0x33a   : > { %v3221_v18 = vld [vmem:[#allocation3 + $0x78] sm:$0xff]   ;;  %v3238_v34 = vld [vmem:[%s3739_s5 + $0x10] sm:$0xff]   ;;  %v3239_v36 = vld [vmem:[#allocation3 + $0x48] sm:$0xff]  }
 0x33b   : > { %v3222_v19 = vld [vmem:[#allocation3 + $0x38] sm:$0xff]   ;;  %2852 = vmatprep.subr.bf16.mxu0 %v3221_v18  ;;  %v3237_v35 = vld [vmem:[#allocation3 + $0x10] sm:$0xff]   ;;  %v3240_v37 = vld [vmem:[#allocation3 + $0x8] sm:$0xff]  }
 0x33c   : > { %2853 = vmatpush3.bf16.msra.mxu0 %v3222_v19  ;;  %v3224_v21 = vld [vmem:[#allocation3 + $0x70] sm:$0xff]   ;;  %3047 = vmatpush3.bf16.msra.mxu1 %v3226_v23  ;;  %v3241_v38 = vld [vmem:[%s3739_s5 + $0x8] sm:$0xff]   ;;  %v3242_v39 = vld [vmem:[#allocation3 + $0x40] sm:$0xff]  }
 0x33d   : > { %v3225_v22 = vld [vmem:[#allocation3 + $0x30] sm:$0xff]   ;;  %2854 = vmatprep.subr.bf16.mxu0 %v3224_v21  ;;  %3048 = vmatprep.subr.bf16.mxu1 %v3229_v26  ;;  %v3244_v40 = vld [vmem:[%s3739_s5] sm:$0xff]   ;;  %v3249_v46 = vld [vmem:[%s3657_s22 + $0x8] sm:$0xff]  }
 0x33e   : > { %v3247_v41 = vld [vmem:[%s3651_s20 + $0x4] ss:$8 sps:$4 sm:$0xff]   ;;  %v3245_v44 = vld [vmem:[%s3651_s20] ss:$8 sps:$4 sm:$0xff]   ;;  %v3250_v45 = vld [vmem:[%s3651_s20 + $0x14] ss:$8 sps:$4 sm:$0xff]  }
 0x33f   : > { %v3248_v42 = vld [vmem:[%s3657_s22] sm:$0xff]   ;;  %1946 = vmatprep.mubr.bf16.mxu0 %v3247_v41  ;;  %v3256_v47 = vld [vmem:[%s3657_s22 + $0x10] sm:$0xff]   ;;  %v3257_v50 = vld [vmem:[%s3657_s22 + $0x18] sm:$0xff]  }
 0x340   : > { %2855 = vmatpush3.bf16.msra.mxu0 %v3225_v22  ;;  %3049 = vmatpush3.bf16.msra.mxu1 %v3229_v26  ;;  %v3243_v43 = vld [vmem:[#allocation3] sm:$0xff]   ;;  %v3252_v48 = vld [vmem:[%s3651_s20 + $0x10] ss:$8 sps:$4 sm:$0xff]   ;;  %v3258_v53 = vld [vmem:[%s3651_s20 + $0x34] ss:$8 sps:$4 sm:$0xff]  }
 0x341   : > { %2856 = vmatprep.subr.bf16.mxu0 %v3227_v24  ;;  %3050 = vmatprep.subr.bf16.mxu1 %v3232_v29  ;;  %v3253_v49 = vld [vmem:[%s3651_s20 + $0x24] ss:$8 sps:$4 sm:$0xff]   ;;  %v3255_v52 = vld [vmem:[%s3651_s20 + $0x20] ss:$8 sps:$4 sm:$0xff]   ;;  %v3272_v55 = vld [vmem:[%s3657_s22 + $0x30] sm:$0xff]  }
 0x342   : > { %3060 = vmatprep.mubr.bf16.mxu1 %v3248_v42  ;;  %v3264_v51 = vld [vmem:[%s3657_s22 + $0x20] sm:$0xff]   ;;  %v3265_v54 = vld [vmem:[%s3657_s22 + $0x28] sm:$0xff]   ;;  %v3260_v56 = vld [vmem:[%s3651_s20 + $0x30] ss:$8 sps:$4 sm:$0xff]  }
 0x343   : > { %v3261_v57 = vld [vmem:[%s3651_s20 + $0x44] ss:$8 sps:$4 sm:$0xff]   ;;  %v3273_v58 = vld [vmem:[%s3657_s22 + $0x38] sm:$0xff]   ;;  %v3263_v59 = vld [vmem:[%s3651_s20 + $0x40] ss:$8 sps:$4 sm:$0xff]  }
 0x344   : > { %2857 = vmatpush3.bf16.msra.mxu0 %v3228_v25  ;;  %3051 = vmatpush3.bf16.msra.mxu1 %v3232_v29  ;;  %v3266_v1 = vld [vmem:[%s3651_s20 + $0x54] ss:$8 sps:$4 sm:$0xff]   ;;  %v3268_v60 = vld [vmem:[%s3651_s20 + $0x50] ss:$8 sps:$4 sm:$0xff]   ;;  %v3269_v2 = vld [vmem:[%s3651_s20 + $0x64] ss:$8 sps:$4 sm:$0xff]  }
 0x345   : > { %2858 = vmatprep.subr.bf16.mxu0 %v3230_v27  ;;  %3052 = vmatprep.subr.bf16.mxu1 %v3235_v31  ;;  %v3271_v4 = vld [vmem:[%s3651_s20 + $0x60] ss:$8 sps:$4 sm:$0xff]   ;;  %v3274_v5 = vld [vmem:[%s3651_s20 + $0x74] ss:$8 sps:$4 sm:$0xff]   ;;  %v3276_v61 = vld [vmem:[%s3651_s20 + $0x70] ss:$8 sps:$4 sm:$0xff]  }
 0x346   : > { %v3685_v11 = vld [vmem:[%s3741_s7] ss:$0 sm:$0xff] }
 0x348   : > { %2859 = vmatpush3.bf16.msra.mxu0 %v3231_v28  ;;  %3053 = vmatpush3.bf16.msra.mxu1 %v3235_v31 }
 0x349   : > { %2860 = vmatprep.subr.bf16.mxu0 %v3233_v30  ;;  %3054 = vmatprep.subr.bf16.mxu1 %v3238_v34 }
 0x34c   : > { %2861 = vmatpush3.bf16.msra.mxu0 %v3234_v32  ;;  %3055 = vmatpush3.bf16.msra.mxu1 %v3238_v34 }
 0x34d   : > { %2862 = vmatprep.subr.bf16.mxu0 %v3236_v33  ;;  %3056 = vmatprep.subr.bf16.mxu1 %v3241_v38 }
 0x350   : > { %2863 = vmatpush3.bf16.msra.mxu0 %v3237_v35  ;;  %3057 = vmatpush3.bf16.msra.mxu1 %v3241_v38 }
 0x351   : > { %2864 = vmatprep.subr.bf16.mxu0 %v3239_v36  ;;  %3058 = vmatprep.subr.bf16.mxu1 %v3244_v40 }
 0x354   : > { %2865 = vmatpush3.bf16.msra.mxu0 %v3240_v37  ;;  %3059 = vmatpush3.bf16.msra.mxu1 %v3244_v40 }
 0x355   : > { %2866 = vmatprep.subr.bf16.mxu0 %v3242_v39 }
 0x357   : > { %3061 = vmatmul.mubr.bf16.vlgmr.msra.gmra.mxu1 %v3249_v46 }
 0x358   : > { %2867 = vmatpush3.bf16.msra.mxu0 %v3243_v43  ;;  %3064 = vmatprep.mubr.bf16.mxu1 %v3256_v47 }
 0x35b   : > { %1947 = vmatmul.mubr.bf16.vlgmr.msra.gmra.mxu0 %v3245_v44 }
 0x35c   : > { %1954 = vmatprep.mubr.bf16.mxu0 %v3250_v45 }
 0x35f   : > { %3065 = vmatmul.mubr.bf16.gmra.mxu1 %v3257_v50 }
 0x360   : > { %3068 = vmatprep.mubr.bf16.mxu1 %v3264_v51 }
 0x363   : > { %1955 = vmatmul.mubr.bf16.gmra.mxu0 %v3252_v48 }
 0x364   : > { %1962 = vmatprep.mubr.bf16.mxu0 %v3253_v49 }
 0x367   : > { %3069 = vmatmul.mubr.bf16.gmra.mxu1 %v3265_v54 }
 0x368   : > { %3072 = vmatprep.mubr.bf16.mxu1 %v3272_v55 }
 0x36b   : > { %1963 = vmatmul.mubr.bf16.gmra.mxu0 %v3255_v52 }
 0x36c   : > { %1970 = vmatprep.mubr.bf16.mxu0 %v3258_v53 }
 0x36f   : > { %3073 = vmatmul.mubr.bf16.gmra.mxu1 %v3273_v58 }
 0x373   : > { %1971 = vmatmul.mubr.bf16.gmra.mxu0 %v3260_v56 }
 0x374   : > { %1978 = vmatprep.mubr.bf16.mxu0 %v3261_v57 }
 0x37b   : > { %1979 = vmatmul.mubr.bf16.gmra.mxu0 %v3263_v59 }
 0x37c   : > { %1986 = vmatprep.mubr.bf16.mxu0 %v3266_v1 }
 0x383   : > { %1987 = vmatmul.mubr.bf16.gmra.mxu0 %v3268_v60 }
 0x384   : > { %1994 = vmatprep.mubr.bf16.mxu0 %v3269_v2 }
 0x38b   : > { %1995 = vmatmul.mubr.bf16.gmra.mxu0 %v3271_v4 }
 0x38c   : > { %2002 = vmatprep.mubr.bf16.mxu0 %v3274_v5 }
 0x393   : > { %2003 = vmatmul.mubr.bf16.gmra.mxu0 %v3276_v61 }
 0x417   : > { %v3062_v8 = vpop.f32.mrf.mxu1 }
 0x419   : > { %v2175_v10 = vpop.f32.mrf.mxu1 }
 0x41b   : > { %v2868_v6 = vpop.f32.mrf.mxu0  ;;  %v3063_v0 = vpop.f32.mrf.mxu1 }
 0x41d   : > { %v2869_v7 = vpop.f32.mrf.mxu0  ;;  %v2178_v15 = vpop.f32.mrf.mxu1 }
 0x41e   : > { %v2870_v62 = vadd.f32 %v2869_v7, %v2868_v6 }
 0x41f   : > { %v2871_v9 = vpop.f32.mrf.mxu0  ;;  %v3066_v18 = vpop.f32.mrf.mxu1 }
 0x420   : > { %v2176_v12 = vadd.f32 %v2870_v62, %v2175_v10 }
 0x421   : > { %v2872_v63 = vpop.f32.mrf.mxu0  ;;  %v2191_v24 = vpop.f32.mrf.mxu1 }
 0x422   : > { %v2245_v3 = vadd.f32 %v3685_v11, %v2176_v12  ;;  %v2873_v13 = vadd.f32 %v2872_v63, %v2871_v9 }
 0x423   : > { %v2874_v14 = vpop.f32.mrf.mxu0  ;;  %v3067_v30 = vpop.f32.mrf.mxu1 }
 0x424   : > { %2261 = vst [vmem:[%s3404_s17] sm:$0xff] %v2245_v3  ;;  %v2179_v16 = vadd.f32 %v2873_v13, %v2178_v15 }
 0x425   : > { %v2875_v17 = vpop.f32.mrf.mxu0  ;;  %v2194_v36 = vpop.f32.mrf.mxu1 }
 0x426   : > { %v2246_v19 = vadd.f32 %v3685_v11, %v2179_v16  ;;  %v2876_v20 = vadd.f32 %v2875_v17, %v2874_v14 }
 0x427   : > { %v2877_v21 = vpop.f32.mrf.mxu0  ;;  %v3070_v42 = vpop.f32.mrf.mxu1 }
 0x428   : > { %2262 = vst [vmem:[%s3404_s17 + $0x8] sm:$0xff] %v2246_v19  ;;  %v2184_v22 = vadd.f32 %v3062_v8, %v2876_v20 }
 0x429   : > { %v2878_v23 = vpop.f32.mrf.mxu0  ;;  %v2207_v48 = vpop.f32.mrf.mxu1 }
 0x42a   : > { %v2247_v25 = vadd.f32 %v3685_v11, %v2184_v22  ;;  %v2879_v26 = vadd.f32 %v2878_v23, %v2877_v21 }
 0x42b   : > { %v2880_v27 = vpop.f32.mrf.mxu0  ;;  %v3071_v54 = vpop.f32.mrf.mxu1 }
 0x42c   : > { %2263 = vst [vmem:[%s3404_s17 + $0x10] sm:$0xff] %v2247_v25  ;;  %v2187_v28 = vadd.f32 %v3063_v0, %v2879_v26 }
 0x42d   : > { %v2881_v29 = vpop.f32.mrf.mxu0  ;;  %v2210_v1 = vpop.f32.mrf.mxu1 }
 0x42e   : > { %v2248_v31 = vadd.f32 %v3685_v11, %v2187_v28  ;;  %v2882_v32 = vadd.f32 %v2881_v29, %v2880_v27 }
 0x42f   : > { %v2883_v33 = vpop.f32.mrf.mxu0  ;;  %v3074_v6 = vpop.f32.mrf.mxu1 }
 0x430   : > { %2264 = vst [vmem:[%s3404_s17 + $0x18] sm:$0xff] %v2248_v31  ;;  %v2192_v34 = vadd.f32 %v2882_v32, %v2191_v24 }
 0x431   : > { %v2884_v35 = vpop.f32.mrf.mxu0  ;;  %v2223_v12 = vpop.f32.mrf.mxu1 }
 0x432   : > { %v2249_v37 = vadd.f32 %v3685_v11, %v2192_v34  ;;  %v2885_v38 = vadd.f32 %v2884_v35, %v2883_v33 }
 0x433   : > { %v2886_v39 = vpop.f32.mrf.mxu0  ;;  %v3075_v15 = vpop.f32.mrf.mxu1 }
 0x434   : > { %2265 = vst [vmem:[%s3404_s17 + $0x20] sm:$0xff] %v2249_v37  ;;  %v2195_v40 = vadd.f32 %v2885_v38, %v2194_v36 }
 0x435   : > { %v2887_v41 = vpop.f32.mrf.mxu0  ;;  %v2226_v21 = vpop.f32.mrf.mxu1 }
 0x436   : > { %v2250_v43 = vadd.f32 %v3685_v11, %v2195_v40  ;;  %v2888_v44 = vadd.f32 %v2887_v41, %v2886_v39 }
 0x437   : > { %v2889_v45 = vpop.f32.mrf.mxu0 }
 0x438   : > { %2266 = vst [vmem:[%s3404_s17 + $0x28] sm:$0xff] %v2250_v43  ;;  %v2200_v46 = vadd.f32 %v3066_v18, %v2888_v44 }
 0x439   : > { %v2890_v47 = vpop.f32.mrf.mxu0 }
 0x43a   : > { %v2251_v49 = vadd.f32 %v3685_v11, %v2200_v46  ;;  %v2891_v50 = vadd.f32 %v2890_v47, %v2889_v45 }
 0x43b   : > { %v2892_v51 = vpop.f32.mrf.mxu0 }
 0x43c   : > { %2267 = vst [vmem:[%s3404_s17 + $0x30] sm:$0xff] %v2251_v49  ;;  %v2203_v52 = vadd.f32 %v3067_v30, %v2891_v50 }
 0x43d   : > { %v2893_v53 = vpop.f32.mrf.mxu0 }
 0x43e   : > { %v2252_v55 = vadd.f32 %v3685_v11, %v2203_v52  ;;  %v2894_v56 = vadd.f32 %v2893_v53, %v2892_v51 }
 0x43f   : > { %v2895_v57 = vpop.f32.mrf.mxu0 }
 0x440   : > { %2268 = vst [vmem:[%s3404_s17 + $0x38] sm:$0xff] %v2252_v55  ;;  %v2208_v58 = vadd.f32 %v2894_v56, %v2207_v48 }
 0x441   : > { %v2896_v59 = vpop.f32.mrf.mxu0 }
 0x442   : > { %v2253_v60 = vadd.f32 %v3685_v11, %v2208_v58  ;;  %v2897_v2 = vadd.f32 %v2896_v59, %v2895_v57 }
 0x443   : > { %v2898_v4 = vpop.f32.mrf.mxu0 }
 0x444   : > { %2269 = vst [vmem:[%s3404_s17 + $0x40] sm:$0xff] %v2253_v60  ;;  %v2211_v5 = vadd.f32 %v2897_v2, %v2210_v1 }
 0x445   : > { %v2899_v61 = vpop.f32.mrf.mxu0 }
 0x446   : > { %v2254_v7 = vadd.f32 %v3685_v11, %v2211_v5  ;;  %v2900_v8 = vadd.f32 %v2899_v61, %v2898_v4 }
 0x447   : > { %v2901_v62 = vpop.f32.mrf.mxu0 }
 0x448   : > { %2270 = vst [vmem:[%s3404_s17 + $0x48] sm:$0xff] %v2254_v7  ;;  %v2216_v9 = vadd.f32 %v3070_v42, %v2900_v8 }
 0x449   : > { %v2902_v10 = vpop.f32.mrf.mxu0 }
 0x44a   : > { %v2255_v63 = vadd.f32 %v3685_v11, %v2216_v9  ;;  %v2903_v0 = vadd.f32 %v2902_v10, %v2901_v62 }
 0x44b   : > { %v2904_v3 = vpop.f32.mrf.mxu0 }
 0x44c   : > { %2271 = vst [vmem:[%s3404_s17 + $0x50] sm:$0xff] %v2255_v63  ;;  %v2219_v13 = vadd.f32 %v3071_v54, %v2903_v0 }
 0x44d   : > { %v2905_v14 = vpop.f32.mrf.mxu0 }
 0x44e   : > { %v2256_v16 = vadd.f32 %v3685_v11, %v2219_v13  ;;  %v2906_v17 = vadd.f32 %v2905_v14, %v2904_v3 }
 0x44f   : > { %v2907_v18 = vpop.f32.mrf.mxu0 }
 0x450   : > { %2272 = vst [vmem:[%s3404_s17 + $0x58] sm:$0xff] %v2256_v16  ;;  %v2224_v19 = vadd.f32 %v2906_v17, %v2223_v12 }
 0x451   : > { %v2908_v20 = vpop.f32.mrf.mxu0 }
 0x452   : > { %v2257_v22 = vadd.f32 %v3685_v11, %v2224_v19  ;;  %v2909_v23 = vadd.f32 %v2908_v20, %v2907_v18 }
 0x453   : > { %v2910_v24 = vpop.f32.mrf.mxu0 }
 0x454   : > { %2273 = vst [vmem:[%s3404_s17 + $0x60] sm:$0xff] %v2257_v22  ;;  %v2227_v25 = vadd.f32 %v2909_v23, %v2226_v21 }
 0x455   : > { %v2911_v26 = vpop.f32.mrf.mxu0 }
 0x456   : > { %v2258_v27 = vadd.f32 %v3685_v11, %v2227_v25  ;;  %v2912_v28 = vadd.f32 %v2911_v26, %v2910_v24 }
 0x457   : > { %v2913_v29 = vpop.f32.mrf.mxu0 }
 0x458   : > { %2274 = vst [vmem:[%s3404_s17 + $0x68] sm:$0xff] %v2258_v27  ;;  %v2232_v30 = vadd.f32 %v3074_v6, %v2912_v28 }
 0x459   : > { %v2914_v31 = vpop.f32.mrf.mxu0 }
 0x45a   : > { %v2259_v32 = vadd.f32 %v3685_v11, %v2232_v30  ;;  %v2915_v33 = vadd.f32 %v2914_v31, %v2913_v29 }
 0x45c   : > { %2275 = vst [vmem:[%s3404_s17 + $0x70] sm:$0xff] %v2259_v32  ;;  %v2235_v34 = vadd.f32 %v3075_v15, %v2915_v33 }
 0x45e   : > { %v2260_v35 = vadd.f32 %v3685_v11, %v2235_v34 }
 0x460   : > { %2276 = vst [vmem:[%s3404_s17 + $0x78] sm:$0xff] %v2260_v35 }
 0x461 PF: > { %s18_s9 = sadd.s32 1, %s3315_s9   ;;  %s3743_s27 = smov %s3307_s29 }
 0x462   : > { %p15_p9 = scmp.ge.s32.totalorder %s18_s9, 6   ;;  %s3744_s28 = smov %s3311_s30 }
 0x463   : > { %s3745_s29 = smov %s3748_s10  ;;  %s3746_s30 = smov %s3752_s11 }
 0x464   :  { %17 = sbr.rel (!%p15_p9) target bundleno = 3 (0x3), region = 96 }

</bundles_post_ra>
